<compile_context>
chip_gen: v7x
topology: tpu7x:2x2x1
jax: 0.10.0
libtpu: 0.0.40
codegen_flags: <defaults>
</compile_context>

<pallas_src>
import functools
import math

import numpy as np
import jax
import jax.numpy as jnp
from jax.experimental import pallas as pl
from jax.experimental.pallas import tpu as pltpu


# ------------------- DCT weight construction (plain numpy, glue) --------------

def get_1d_dct(i, freq, L):
    result = math.cos(math.pi * freq * (i + 0.5) / L) / math.sqrt(L)
    if freq == 0:
        return result
    return result * math.sqrt(2)


def get_dct_weights(width, height, channel,
                    fidx_u=(0, 0, 6, 0, 0, 1, 1, 4, 5, 1, 3, 0, 0, 0, 2, 3),
                    fidx_v=(0, 1, 0, 5, 2, 0, 2, 0, 0, 6, 0, 4, 6, 3, 2, 5)):
    # Mirrors the PyTorch buffer: shape (1, channel, width, height).
    scale_ratio = width // 7
    fidx_u = [u * scale_ratio for u in fidx_u]
    fidx_v = [v * scale_ratio for v in fidx_v]
    dct_weights = np.zeros((1, channel, width, height), dtype=np.float32)
    c_part = channel // len(fidx_u)
    for i, (u_x, v_y) in enumerate(zip(fidx_u, fidx_v)):
        for t_x in range(width):
            for t_y in range(height):
                dct_weights[:, i * c_part:(i + 1) * c_part, t_x, t_y] = (
                    get_1d_dct(t_x, u_x, width) * get_1d_dct(t_y, v_y, height))
    return dct_weights


# ----------------------- generation-aware VMEM budgeting -----------------------

def _derive_vmem_limit():
    try:
        phys = int(pltpu.get_tpu_info().vmem_capacity_bytes)
    except Exception:
        phys = 128 * 1024 * 1024
    # 3/4 of physical, capped at 96 MiB: 96 MiB on v5e/v6e (128 MiB phys),
    # 48 MiB on v7x (64 MiB phys).
    return int(min((phys * 3) // 4, 96 * 1024 * 1024))


_VMEM_LIMIT = _derive_vmem_limit()
_VMEM_USABLE = int(_VMEM_LIMIT * 0.8)        # headroom for compiler scratch


def _round_up(x, m):
    return (x + m - 1) // m * m


def _choose_channel_block(C, hw_pad, usable):
    """Channel-block size Cb: a divisor of C that is a multiple of 8 (or C
    itself), such that a per-block resident weff (Cb, hw_pad) f32, double
    buffered, stays <= half the usable VMEM.  Prefers >= 2 blocks so both v7x
    TensorCores get work; harmless on single-TC v5e/v6e."""
    cands = sorted({cb for cb in range(8, C + 1, 8) if C % cb == 0} | {C})
    fits = [cb for cb in cands if 2 * cb * hw_pad * 4 <= usable // 2]
    if not fits:
        return cands[0]
    multi = [cb for cb in fits if cb < C]
    return multi[-1] if multi else fits[-1]


def _pick_tile(hw_pad, cb, tile_bytes_budget):
    """Largest multiple-of-128 divisor of hw_pad whose (cb, T) f32 tile fits the
    per-tile byte budget (hw_pad is always a multiple of 128)."""
    cap = max(128, tile_bytes_budget // (4 * cb))
    if hw_pad <= cap:
        return hw_pad
    best = 128
    t = 128
    while t <= min(hw_pad, cap):
        if hw_pad % t == 0:
            best = t
        t += 128
    return best


# ------------------------------- Pallas kernels -------------------------------

def _descriptor_kernel(x_ref, w_ref, y_ref, *, tile):
    # x_ref: (1, Cb, T) streaming tile of x.
    # w_ref: (Cb, HWp) pool-folded weights, resident per channel block (its
    #        block index is constant over b and t, so it is DMA'd from HBM only
    #        when the channel block changes -> weff read exactly once overall).
    # y_ref: (1, Cb, 1) descriptor accumulator, resident across the t axis.
    t = pl.program_id(2)

    @pl.when(t == 0)
    def _():
        y_ref[...] = jnp.zeros_like(y_ref)

    start = pl.multiple_of(t * tile, 128)
    w = w_ref[:, pl.ds(start, tile)]
    y_ref[...] += jnp.sum(x_ref[...] * w[None], axis=-1, keepdims=True)


def _rescale_kernel(x_ref, s_ref, o_ref):
    # x_ref/o_ref: (1, Cb, T); s_ref: (1, Cb, 1) broadcast over the lane axis.
    o_ref[...] = x_ref[...] * s_ref[...]


def _fused_kernel(x_ref, w_ref, w1t_ref, w2_ref, o_ref):
    # Single-pass path: one image resident in VMEM.
    # x_ref/o_ref: (1, C, HWp); w_ref: (C, HWp); w1t_ref: (C, Cr); w2_ref: (C, Cr)
    x = x_ref[...]                                               # (1, C, HWp)
    y = jnp.sum(x[0] * w_ref[...], axis=-1, keepdims=True)       # (C, 1)
    # Tiny bias-free MLP, expressed as broadcast-multiply + reductions so no
    # transposes / micro-matmuls are needed:
    #   h[r] = sum_c W1[r, c] * y[c]    (w1t = W1^T, shape (C, Cr))
    #   z[c] = sum_r W2[c, r] * h[r]    (w2 shape (C, Cr))
    h = jnp.maximum(jnp.sum(w1t_ref[...] * y, axis=0, keepdims=True), 0.0)  # (1, Cr)
    z = jnp.sum(w2_ref[...] * h, axis=-1, keepdims=True)                    # (C, 1)
    s = 1.0 / (1.0 + jnp.exp(-z))
    o_ref[...] = x * s[None]


# ------------------------------ host-side wrapper ------------------------------

def make_fca_params(dct_w, H, W):
    """Call-invariant preprocessing: fold the non-overlapping block-mean pool
    into the DCT weights.  dct_w: (C, S, S) -> weff: (C, H*W)."""
    C, Sh, Sw = dct_w.shape
    assert H % Sh == 0 and W % Sw == 0, (
        "adaptive_avg_pool2d with non-divisible sizes uses overlapping windows; "
        "this kernel only folds exact block-mean pooling")
    kh, kw = H // Sh, W // Sw
    weff = jnp.repeat(jnp.repeat(dct_w, kh, axis=1), kw, axis=2) / float(kh * kw)
    return weff.reshape(C, H * W)


@functools.partial(jax.jit, static_argnames=("tile_hw", "force_two_pass"))
def fca_layer_pallas(x_nchw, weff2, w1, w2, tile_hw=None, force_two_pass=False):
    """FcaLayer forward.
    x_nchw: (B, C, H, W) f32; weff2: (C, H*W) pool-folded DCT weights;
    w1: (Cr, C) first fc weight; w2: (C, Cr) second fc weight (both bias-free)."""
    B, C, H, W = x_nchw.shape
    Cr = w1.shape[0]
    HW = H * W
    HWp = _round_up(HW, 128)

    x2 = x_nchw.reshape(B, C, HW)                 # free reshape, no transpose
    w2d = weff2
    if HWp != HW:
        # Zero padding keeps the descriptor exact (padded weights are zero) and
        # keeps all blocks lane-dense / (8,128)-legal.
        # TODO(synk): an in-kernel mask on the last spatial tile would avoid the
        # extra pad copy for awkward H*W.
        pad = HWp - HW
        x2 = jnp.pad(x2, ((0, 0), (0, 0), (0, pad)))
        w2d = jnp.pad(w2d, ((0, 0), (0, pad)))

    slab = C * HWp * 4                             # one (C, HWp) f32 slab

    # ---------------- fused single-pass path (x resident in VMEM) ----------------
    if (not force_two_pass) and (6 * slab <= _VMEM_USABLE):
        out2 = pl.pallas_call(
            _fused_kernel,
            out_shape=jax.ShapeDtypeStruct((B, C, HWp), jnp.float32),
            grid=(B,),
            in_specs=[
                pl.BlockSpec((1, C, HWp), lambda b: (b, 0, 0)),
                pl.BlockSpec((C, HWp), lambda b: (0, 0)),       # fetched once
                pl.BlockSpec((C, Cr), lambda b: (0, 0)),        # fetched once
                pl.BlockSpec((C, Cr), lambda b: (0, 0)),        # fetched once
            ],
            out_specs=pl.BlockSpec((1, C, HWp), lambda b: (b, 0, 0)),
            compiler_params=pltpu.CompilerParams(
                dimension_semantics=("parallel",),
                vmem_limit_bytes=_VMEM_LIMIT),
        )(x2, w2d, jnp.transpose(w1), w2)
        return out2[:, :, :HW].reshape(B, C, H, W)

    # ------------------------------ two-pass path ------------------------------
    Cb = _choose_channel_block(C, HWp, _VMEM_USABLE)
    n_c = C // Cb
    weff_resident = 2 * Cb * HWp * 4
    # pass 1 holds 2 x-tiles + resident weff; pass 2 holds 2 x-tiles + 2 out-tiles
    tile_budget = min(max(_VMEM_USABLE - weff_resident, 0) // 2, _VMEM_USABLE // 4)
    tile_budget = max(tile_budget, Cb * 128 * 4)
    T = _pick_tile(HWp, Cb, tile_budget) if tile_hw is None else tile_hw
    assert HWp % T == 0 and (T % 128 == 0 or T == HWp), "spatial tile must be lane-dense"
    n_t = HWp // T

    # ---- pass 1: per-channel DCT-weighted pooled descriptor y: (B, C, 1) ----
    y3 = pl.pallas_call(
        functools.partial(_descriptor_kernel, tile=T),
        out_shape=jax.ShapeDtypeStruct((B, C, 1), jnp.float32),
        grid=(n_c, B, n_t),
        in_specs=[
            pl.BlockSpec((1, Cb, T), lambda c, b, t: (b, c, t)),
            pl.BlockSpec((Cb, HWp), lambda c, b, t: (c, 0)),    # resident per c-block
        ],
        out_specs=pl.BlockSpec((1, Cb, 1), lambda c, b, t: (b, c, 0)),
        compiler_params=pltpu.CompilerParams(
            dimension_semantics=("parallel", "parallel", "arbitrary"),
            vmem_limit_bytes=_VMEM_LIMIT),
    )(x2, w2d)

    # ---- tiny bias-free MLP + sigmoid, batched over B (plain JAX glue) ----
    y = y3[:, :, 0]                                            # (B, C)
    s = jax.nn.sigmoid(jnp.maximum(y @ w1.T, 0.0) @ w2.T)      # (B, C)

    # ---- pass 2: streaming channel-wise rescale, lane-dense tiles ----
    out2 = pl.pallas_call(
        _rescale_kernel,
        out_shape=jax.ShapeDtypeStruct((B, C, HWp), jnp.float32),
        grid=(n_c, B, n_t),
        in_specs=[
            pl.BlockSpec((1, Cb, T), lambda c, b, t: (b, c, t)),
            pl.BlockSpec((1, Cb, 1), lambda c, b, t: (b, c, 0)),
        ],
        out_specs=pl.BlockSpec((1, Cb, T), lambda c, b, t: (b, c, t)),
        compiler_params=pltpu.CompilerParams(
            dimension_semantics=("parallel", "parallel", "parallel"),
            vmem_limit_bytes=_VMEM_LIMIT),
    )(x2, s[:, :, None])

    return out2[:, :, :HW].reshape(B, C, H, W)


# ------------------------- pure-JAX reference (NCHW) --------------------------

def fca_layer_ref(x, dct_w, w1, w2, pooled_hw):
    B, C, H, W = x.shape
    S = pooled_hw
    kh, kw = H // S, W // S
    pooled = x.reshape(B, C, S, kh, S, kw).mean(axis=(3, 5))     # adaptive_avg_pool2d
    y = jnp.sum(pooled * dct_w[None], axis=(2, 3))               # (B, C)
    h = jnp.maximum(y @ w1.T, 0.0)
    s = 1.0 / (1.0 + jnp.exp(-(h @ w2.T)))
    return x * s[:, :, None, None]


if __name__ == "__main__":
    # FcaLayer(channel=16, reduction=4, width=8, height=8) on a
    # (B=2, C=16, 16, 16) input (16 % 8 == 0 -> exact block-mean pooling;
    # channel >= 16 so the DCT frequency split has c_part >= 1).
    B, C, H, W = 2, 16, 16, 16
    S = 8
    reduction = 4
    Cr = C // reduction

    dct_w = jnp.asarray(get_dct_weights(S, S, C)[0])             # (C, S, S)

    key = jax.random.PRNGKey(0)
    kx, k1, k2 = jax.random.split(key, 3)
    x = jax.random.normal(kx, (B, C, H, W), dtype=jnp.float32)
    w1 = jax.random.normal(k1, (Cr, C), dtype=jnp.float32) * 0.1  # Linear(C -> Cr)
    w2 = jax.random.normal(k2, (C, Cr), dtype=jnp.float32) * 0.1  # Linear(Cr -> C)

    # Hoisted weight preprocessing (pool folding).
    weff2 = make_fca_params(dct_w, H, W)

    ref = fca_layer_ref(x, dct_w, w1, w2, S)

    # 1) fused single-pass path (auto-selected at this size).
    out_fused = jax.block_until_ready(fca_layer_pallas(x, weff2, w1, w2))
    assert out_fused.shape == x.shape and out_fused.dtype == x.dtype
    np.testing.assert_allclose(np.asarray(out_fused), np.asarray(ref),
                               rtol=1e-4, atol=1e-4)

    # 2) two-pass streaming path forced with a small tile, exercising the tiled
    #    accumulation, resident weff, and channel-blocked (v7x) grid.
    out_tiled = jax.block_until_ready(
        fca_layer_pallas(x, weff2, w1, w2, tile_hw=128, force_two_pass=True))
    np.testing.assert_allclose(np.asarray(out_tiled), np.asarray(ref),
                               rtol=1e-4, atol=1e-4)

    print("KERNEL_OK")
</pallas_src>

<mosaic_0001>
module attributes {stable_mosaic.version = 11 : i64} {
  func.func @_fused_kernel(%arg0: i32, %arg1: memref<1x16x256xf32, #tpu.memory_space<vmem>>, %arg2: memref<16x256xf32, #tpu.memory_space<vmem>>, %arg3: memref<16x4xf32, #tpu.memory_space<vmem>>, %arg4: memref<16x4xf32, #tpu.memory_space<vmem>>, %arg5: memref<1x16x256xf32, #tpu.memory_space<vmem>>) attributes {dimension_semantics = [#tpu.dimension_semantics<parallel>], iteration_bounds = array<i64: 2>, scalar_prefetch = 0 : i64, scratch_operands = 0 : i64, tpu.core_type = #tpu.core_type<tc>, window_params = [{transform_indices = @transform_0, window_bounds = array<i64: 1, 16, 256>}, {pipeline_mode = #tpu.pipeline_mode<synchronous>, transform_indices = @transform_1, window_bounds = array<i64: 16, 256>}, {pipeline_mode = #tpu.pipeline_mode<synchronous>, transform_indices = @transform_2, window_bounds = array<i64: 16, 4>}, {pipeline_mode = #tpu.pipeline_mode<synchronous>, transform_indices = @transform_3, window_bounds = array<i64: 16, 4>}, {transform_indices = @transform_4, window_bounds = array<i64: 1, 16, 256>}]} {
    %c0 = arith.constant 0 : index
    %c0_0 = arith.constant 0 : index
    %c0_1 = arith.constant 0 : index
    %0 = vector.load %arg1[%c0, %c0_0, %c0_1] : memref<1x16x256xf32, #tpu.memory_space<vmem>>, vector<1x16x256xf32>
    %1 = vector.shape_cast %0 : vector<1x16x256xf32> to vector<16x256xf32>
    %c0_2 = arith.constant 0 : index
    %c0_3 = arith.constant 0 : index
    %2 = vector.load %arg2[%c0_2, %c0_3] : memref<16x256xf32, #tpu.memory_space<vmem>>, vector<16x256xf32>
    %3 = arith.mulf %1, %2 : vector<16x256xf32>
    %cst = arith.constant dense<0.000000e+00> : vector<16xf32>
    %4 = vector.multi_reduction <add>, %3, %cst [1] : vector<16x256xf32> to vector<16xf32>
    %5 = vector.shape_cast %4 : vector<16xf32> to vector<16x1xf32>
    %c0_4 = arith.constant 0 : index
    %c0_5 = arith.constant 0 : index
    %6 = vector.load %arg3[%c0_4, %c0_5] : memref<16x4xf32, #tpu.memory_space<vmem>>, vector<16x4xf32>
    %7 = vector.broadcast %5 : vector<16x1xf32> to vector<16x4xf32>
    %8 = arith.mulf %6, %7 : vector<16x4xf32>
    %cst_6 = arith.constant dense<0.000000e+00> : vector<4xf32>
    %9 = vector.multi_reduction <add>, %8, %cst_6 [0] : vector<16x4xf32> to vector<4xf32>
    %10 = vector.shape_cast %9 : vector<4xf32> to vector<1x4xf32>
    %cst_7 = arith.constant 0.000000e+00 : f32
    %11 = vector.broadcast %cst_7 : f32 to vector<1x4xf32>
    %12 = arith.maximumf %10, %11 : vector<1x4xf32>
    %c0_8 = arith.constant 0 : index
    %c0_9 = arith.constant 0 : index
    %13 = vector.load %arg4[%c0_8, %c0_9] : memref<16x4xf32, #tpu.memory_space<vmem>>, vector<16x4xf32>
    %14 = vector.broadcast %12 : vector<1x4xf32> to vector<16x4xf32>
    %15 = arith.mulf %13, %14 : vector<16x4xf32>
    %cst_10 = arith.constant dense<0.000000e+00> : vector<16xf32>
    %16 = vector.multi_reduction <add>, %15, %cst_10 [1] : vector<16x4xf32> to vector<16xf32>
    %17 = vector.shape_cast %16 : vector<16xf32> to vector<16x1xf32>
    %cst_11 = arith.constant 0.000000e+00 : f32
    %18 = vector.broadcast %cst_11 : f32 to vector<16x1xf32>
    %19 = arith.subf %18, %17 : vector<16x1xf32>
    %20 = math.exp %19 : vector<16x1xf32>
    %cst_12 = arith.constant 1.000000e+00 : f32
    %21 = vector.broadcast %cst_12 : f32 to vector<16x1xf32>
    %22 = arith.addf %21, %20 : vector<16x1xf32>
    %cst_13 = arith.constant 1.000000e+00 : f32
    %23 = vector.broadcast %cst_13 : f32 to vector<16x1xf32>
    %24 = arith.divf %23, %22 : vector<16x1xf32>
    %25 = vector.shape_cast %24 : vector<16x1xf32> to vector<1x16x1xf32>
    %26 = vector.broadcast %25 : vector<1x16x1xf32> to vector<1x16x256xf32>
    %27 = arith.mulf %0, %26 : vector<1x16x256xf32>
    %c0_14 = arith.constant 0 : index
    %c0_15 = arith.constant 0 : index
    %c0_16 = arith.constant 0 : index
    %28 = vector.load %arg5[%c0_14, %c0_15, %c0_16] : memref<1x16x256xf32, #tpu.memory_space<vmem>>, vector<1x16x256xf32>
    tpu.vector_store %arg5[%c0_14, %c0_15, %c0_16], %27 {strides = array<i32>} : memref<1x16x256xf32, #tpu.memory_space<vmem>>, vector<1x16x256xf32>,
    return
  }
  func.func @transform_0(%arg0: i32) -> (i32, i32, i32) {
    %c0_i32 = arith.constant 0 : i32
    %c0_i32_0 = arith.constant 0 : i32
    %c0_i32_1 = arith.constant 0 : i32
    return %arg0, %c0_i32, %c0_i32_0 : i32, i32, i32
  }
  func.func @transform_1(%arg0: i32) -> (i32, i32) {
    %c0_i32 = arith.constant 0 : i32
    %c0_i32_0 = arith.constant 0 : i32
    %c0_i32_1 = arith.constant 0 : i32
    return %c0_i32, %c0_i32_0 : i32, i32
  }
  func.func @transform_2(%arg0: i32) -> (i32, i32) {
    %c0_i32 = arith.constant 0 : i32
    %c0_i32_0 = arith.constant 0 : i32
    %c0_i32_1 = arith.constant 0 : i32
    return %c0_i32, %c0_i32_0 : i32, i32
  }
  func.func @transform_3(%arg0: i32) -> (i32, i32) {
    %c0_i32 = arith.constant 0 : i32
    %c0_i32_0 = arith.constant 0 : i32
    %c0_i32_1 = arith.constant 0 : i32
    return %c0_i32, %c0_i32_0 : i32, i32
  }
  func.func @transform_4(%arg0: i32) -> (i32, i32, i32) {
    %c0_i32 = arith.constant 0 : i32
    %c0_i32_0 = arith.constant 0 : i32
    %c0_i32_1 = arith.constant 0 : i32
    return %arg0, %c0_i32, %c0_i32_0 : i32, i32, i32
  }
}

</mosaic_0001>

<bundles_post_ra>
// kernel: fca_layer_pallas.1
= control target key start
LH: loop header
LB: loop body
LE: loop exit
PB: predicated region body
PF: predicated region fallthrough
CT: control target
= control target key end

     0   :  { %9 = vsyncpa [#allocation3], 0  ;;  %s1048_s0 = inlined_call_operand.hbm [shape: f32[2,16,256], index: 0, kind: input, shape index: {}]   ;;  %s1049_s1 = inlined_call_operand.hbm [shape: f32[16,256], index: 1, kind: input, shape index: {}]   ;;  %s1050_s2 = inlined_call_operand.hbm [shape: f32[16,4], index: 2, kind: input, shape index: {}]   ;;  %s1051_s3 = inlined_call_operand.hbm [shape: f32[16,4], index: 3, kind: input, shape index: {}]   ;;  %s1052_s4 = inlined_call_operand.hbm [shape: f32[2,16,256], index: 4, kind: output, shape index: {}]  }
   0x1   :  { %11 = vsyncpa [#allocation3 + $0x1], 0 }
   0x2   :  { %12 = vsyncpa [#allocation6], 0 }
   0x3   :  { %13 = vsyncpa [#allocation9], 0 }
   0x4   :  { %14 = vsyncpa [#allocation4], 0 }
   0x5   :  { %16 = vsyncpa [#allocation4 + $0x1], 0  ;;  %s778_s15 = smov 0   ;;  %s780_s16 = smov 0  }
   0x6   :  { %s782_s17 = smov 0   ;;  %s784_s18 = smov 0  }
   0x7 LB: > { %s799_s19 = sadd.s32 4294967295, %s740_s18   ;;  %s439_s20 = sadd.s32 4294967294, %s740_s18   ;;  %s740_s18 = sphi %s784_s18, %s1077_s18   ;;  %s736_s17 = sphi %s782_s17, %s1076_s17   ;;  %s732_s16 = sphi %s780_s16, %s1075_s16   ;;  %s728_s15 = sphi %s778_s15, %s1074_s15  }
   0x8   : > { %p42_p0 = scmp.ne.s32.totalorder %s732_s16, %s728_s15  ;;  %p1053_p1 = scmp.eq.s32.totalorder %s799_s19, 0 }
   0x9   : > { %p135_p3 = scmp.eq.s32.totalorder %s439_s20, 1  ;;  %p440_p5 = scmp.ge.s32.totalorder %s740_s18, 1 }
   0xa   : > { %p808_p4 = por %p1053_p1, %p42_p0  ;;  %p142_p7 = scmp.lt.s32.totalorder %s740_s18, 3 }
   0xb   : > { %p813_p6 = por %p135_p3, %p42_p0  ;;  %s742_s24 = smov [#allocation5]  }
   0xc   : > { %s1057_s21 = scalar_select %p808_p4, 1, 0 }
   0xd   : > { %s1058_s22 = scalar_select %p813_p6, 1, 0 }
   0xe   : > { %p818_p8 = pnand %p440_p5, %p142_p7  ;;  %s154_s25 = sshll.u32 %s742_s24, 4  ;;  %s822_s25 = int_to_ptr.vmem [resolvable:$true] %s154_s25 }
   0xf   : > { %s743_s27 = smov [#allocation7]   ;;  %s552_s5 = scalar_lea.hbm %s1049_s1, 512 }
  0x10   : > { %s1059_s23 = scalar_select %p818_p8, 1, 0 }
  0x11   : > { %p477_p9 = pneg %p818_p8  ;;  %s167_s28 = sshll.u32 %s743_s27, 4  ;;  %s833_s28 = int_to_ptr.vmem [resolvable:$true] %s167_s28 }
  0x12   : > { %p553_p12 = scmp.ne.s32.totalorder %s1049_s1, %s552_s5  ;;  %p559_p5 = scmp.lt.u32.totalorder %s552_s5, %s1049_s1 }
  0x13   : > { %p829_p11 = pnand %p477_p9, %p1053_p1 }
  0x15   : > { %p843_p13 = pneg %p829_p11 }
  0x17   : > { %p555_p0 = pnand %p843_p13, %p553_p12 }
  0x19   : > { %p556_p3 = pneg %p555_p0 }
  0x1b   : > { %p561_p7 = pnand %p559_p5, %p556_p3 }
  0x1d   : > { %564 = shalt.err (!%p561_p7)
}
  0x1e   : > { %s565_s11 = scalar_lea.vmem %s822_s25, 512  ;;  %p573_p2 = scmp.lt.s32.totalorder %s822_s25, %s822_s25 }
  0x1f   : > { %p566_p9 = scmp.ne.s32.totalorder %s822_s25, %s565_s11  ;;  %p574_p6 = scmp.lt.s32.totalorder %s565_s11, %s565_s11 }
  0x21   : > { %p568_p10 = pnand %p566_p9, %p843_p13  ;;  %p575_p12 = por %p574_p6, %p573_p2 }
  0x23   : > { %p569_p1 = pneg %p568_p10 }
  0x25   : > { %p576_p0 = pnand %p575_p12, %p569_p1 }
  0x27   : > { %579 = shalt.err (!%p576_p0)
}
  0x28   : > { %s1054_s12 = smov 256   ;;  %s745_s13 = smov 16  }
  0x29   : > { %480 = dma.hbm_to_vmem [thread:$0]  (!%p829_p11), %s1049_s1, 512, %s822_s25, [#allocation6], %s1054_s12, %s1054_s12, %s745_s13  }
  0x2a   : > { %s580_s29 = scalar_lea.hbm %s1050_s2, 256 }
  0x2b   : > { %p581_p1 = scmp.ne.s32.totalorder %s1050_s2, %s580_s29  ;;  %p587_p10 = scmp.lt.u32.totalorder %s580_s29, %s1050_s2 }
  0x2d   : > { %p583_p2 = pnand %p581_p1, %p843_p13 }
  0x2f   : > { %p584_p6 = pneg %p583_p2 }
  0x31   : > { %p589_p3 = pnand %p587_p10, %p584_p6 }
  0x33   : > { %592 = shalt.err (!%p589_p3)
}
  0x34   : > { %s593_s25 = scalar_lea.vmem %s833_s28, 256  ;;  %p601_p12 = scmp.lt.s32.totalorder %s833_s28, %s833_s28 }
  0x35   : > { %p594_p5 = scmp.ne.s32.totalorder %s833_s28, %s593_s25  ;;  %p602_p0 = scmp.lt.s32.totalorder %s593_s25, %s593_s25 }
  0x37   : > { %p596_p7 = pnand %p594_p5, %p843_p13  ;;  %p603_p1 = por %p602_p0, %p601_p12 }
  0x39   : > { %p597_p9 = pneg %p596_p7 }
  0x3b   : > { %p604_p2 = pnand %p603_p1, %p597_p9 }
  0x3d   : > { %607 = shalt.err (!%p604_p2)
}
  0x3e   : > { %s746_s9 = smov 128   ;;  %s747_s10 = smov 8  }
  0x3f   : > { %483 = dma.hbm_to_vmem [thread:$0]  (!%p829_p11), %s1050_s2, 256, %s833_s28, [#allocation6], %s746_s9, %s746_s9, %s747_s10  }
  0x40   : > { %s748_s20 = smov [#allocation8]   ;;  %s891_s27 = sadd.s32 1, %s740_s18  }
  0x41   : > { %s180_s24 = sshll.u32 %s748_s20, 4  ;;  %s608_s5 = scalar_lea.hbm %s1051_s3, 256  ;;  %s181_s24 = int_to_ptr.vmem [resolvable:$true] %s180_s24 }
  0x42   : > { %p609_p6 = scmp.ne.s32.totalorder %s1051_s3, %s608_s5  ;;  %p615_p5 = scmp.lt.u32.totalorder %s608_s5, %s1051_s3 }
  0x44   : > { %p611_p10 = pnand %p609_p6, %p843_p13 }
  0x46   : > { %p612_p3 = pneg %p611_p10 }
  0x48   : > { %p617_p7 = pnand %p615_p5, %p612_p3 }
  0x4a   : > { %620 = shalt.err (!%p617_p7)
}
  0x4b   : > { %s621_s28 = scalar_lea.vmem %s181_s24, 256  ;;  %p629_p1 = scmp.lt.s32.totalorder %s181_s24, %s181_s24 }
  0x4c   : > { %p622_p9 = scmp.ne.s32.totalorder %s181_s24, %s621_s28  ;;  %p630_p2 = scmp.lt.s32.totalorder %s621_s28, %s621_s28 }
  0x4e   : > { %p624_p12 = pnand %p622_p9, %p843_p13  ;;  %p631_p4 = por %p630_p2, %p629_p1 }
  0x50   : > { %p625_p0 = pneg %p624_p12 }
  0x52   : > { %p632_p8 = pnand %p631_p4, %p625_p0 }
  0x54   : > { %635 = shalt.err (!%p632_p8)
}
  0x55   : > { %486 = dma.hbm_to_vmem [thread:$0]  (!%p829_p11), %s1051_s3, 256, %s181_s24, [#allocation9], %s746_s9, %s746_s9, %s747_s10  }
  0x56   : > { %s26_s8 = ssub.s32 %s740_s18, %s891_s27  ;;  %s29_s12 = sadd.s32 1, %s736_s17 }
  0x57   : > { %p27_p4 = scmp.eq.s32.totalorder %s26_s8, 0  ;;  %p36_p8 = scmp.ne.s32.totalorder %s736_s17, %s732_s16 }
  0x58   : > { %p37_p13 = scmp.eq.s32.totalorder %s740_s18, 0  ;;  %p498_p6 = scmp.lt.s32.totalorder %s740_s18, 2 }
  0x59   : > { %s919_s26 = scalar_select %p27_p4, %s736_s17, %s29_s12  }
  0x5a   : > { %p38_p10 = por %p37_p13, %p36_p8  ;;  %p1062_p3 = scmp.eq.s32.totalorder %s799_s19, 1 }
  0x5b   : > { %s194_s29 = sand.u32 1, %s736_s17   ;;  %s459_s30 = sshll.u32 %s740_s18, 9 }
  0x5c   : > { %p923_p5 = por %p1062_p3, %p36_p8  ;;  %s445_s5 = sshll.u32 %s194_s29, 5 }
  0x5d   : > { %s932_s9 = scalar_lea.hbm %s1048_s0, %s459_s30  ;;  %s198_s10 = scalar_lea.vmem [#allocation2], %s445_s5 }
  0x5e   : > { %s205_s24 = sshll.u32 %s198_s10, 4  ;;  %p934_p11 = pnand %p498_p6, %p38_p10  ;;  %s938_s24 = int_to_ptr.vmem [resolvable:$true] %s205_s24 }
  0x5f   : > { %s940_s28 = scalar_lea.sflag [#allocation3], %s194_s29  ;;  %s636_s11 = scalar_lea.hbm %s932_s9, 512 }
  0x60   : > { %p637_p7 = scmp.ne.s32.totalorder %s932_s9, %s636_s11  ;;  %p638_p9 = pneg %p934_p11 }
  0x61   : > { %s641_s12 = scalar_lea.hbm %s1048_s0, 1024  ;;  %p642_p1 = scmp.lt.u32.totalorder %s932_s9, %s1048_s0 }
  0x62   : > { %p639_p12 = pnand %p638_p9, %p637_p7  ;;  %p643_p2 = scmp.lt.u32.totalorder %s641_s12, %s636_s11 }
  0x63   : > { %p645_p8 = scmp.lt.u32.totalorder %s636_s11, %s932_s9 }
  0x64   : > { %p640_p0 = pneg %p639_p12  ;;  %p644_p4 = por %p643_p2, %p642_p1 }
  0x66   : > { %p646_p13 = por %p645_p8, %p644_p4 }
  0x68   : > { %p647_p6 = pnand %p646_p13, %p640_p0 }
  0x6a   : > { %650 = shalt.err (!%p647_p6)
}
  0x6b   : > { %s651_s29 = scalar_lea.vmem %s938_s24, 512  ;;  %s749_s6 = smov [#allocation2]  }
  0x6c   : > { %p652_p10 = scmp.ne.s32.totalorder %s938_s24, %s651_s29  ;;  %s656_s7 = sshll.u32 %s749_s6, 4  ;;  %s657_s7 = int_to_ptr.vmem [resolvable:$false] %s656_s7 }
  0x6d   : > { %s658_s10 = scalar_lea.vmem %s657_s7, 1024  ;;  %p659_p12 = scmp.lt.s32.totalorder %s938_s24, %s657_s7 }
  0x6e   : > { %p654_p3 = pnand %p652_p10, %p638_p9  ;;  %p660_p1 = scmp.lt.s32.totalorder %s658_s10, %s651_s29 }
  0x70   : > { %p655_p7 = pneg %p654_p3  ;;  %p661_p2 = por %p660_p1, %p659_p12 }
  0x72   : > { %p662_p4 = pnand %p661_p2, %p655_p7 }
  0x74   : > { %665 = shalt.err (!%p662_p4)
}
  0x75   : > { %s1065_s11 = smov 256   ;;  %p1066_p9 = scmp.ne.s32.totalorder %s1059_s23, 0 }
  0x76   : > { %490 = dma.hbm_to_vmem [thread:$0]  (!%p934_p11), %s932_s9, 512, %s938_s24, %s940_s28, %s1065_s11, %s1065_s11, %s745_s13  }
  0x77   : > { %217 = sbr.rel (%p1066_p9) target bundleno = 499 (0x1f3), region = 36  ;;  %s974_s14 = sand.u32 (!%p1066_p9), 1, %s732_s16  }
  0x78   : > { %s449_s8 = sshll.u32 (!%p1066_p9), %s974_s14, 5  ;;  %s220_s12 = scalar_lea.sflag (!%p1066_p9), [#allocation3], %s974_s14 }
  0x79   : > { %s223_s25 = scalar_lea.vmem (!%p1066_p9), [#allocation2], %s449_s8  ;;  %p1067_p0 = scmp.ne.s32.totalorder (!%p1066_p9), %s1057_s21, 0 }
  0x7e   : > { %711 = dma.done.wait (%p1067_p0), %s220_s12, 512  }
  0x7f   : > { %713 = vsyncadd (%p1067_p0), %s220_s12, 4294966784  ;;  %p1068_p11 = scmp.eq.s32.totalorder %s799_s19, 0 }
  0x81   : > { %715 = dma.done.wait (%p1068_p11), [#allocation6], 768   ;;  %p1069_p8 = pmov %p1068_p11 }
  0x83   : > { %717 = vsyncadd (%p1069_p8), [#allocation6], 4294966528  ;;  %p1070_p13 = pmov %p1069_p8 }
  0x84   : > { %p1071_p6 = pmov %p1069_p8 }
  0x85   : > { %719 = dma.done.wait (%p1070_p13), [#allocation9], 256  }
  0x86   : > { %721 = vsyncadd (%p1071_p6), [#allocation9], 4294967040  ;;  %v260_v0 = vld [vmem:[%s223_s25] sm:$0xff]  ;;  %v261_v1 = vld [vmem:[%s223_s25 + $0x8] sm:$0xff]  ;;  %vm282_vm0 = vcmask 31744   ;;  %s460_s21 = sshll.u32 %s799_s19, 9 }
  0x87   : > { %v264_v2 = vld [vmem:[#allocation5] sm:$0xff]  ;;  %v265_v3 = vld [vmem:[#allocation5 + $0x8] sm:$0xff]  ;;  %v262_v5 = vld [vmem:[%s223_s25 + $0x10] sm:$0xff]  ;;  %s259_s23 = scalar_lea.vmem [#allocation10], %s449_s8  ;;  %s1002_s28 = scalar_lea.hbm %s1052_s4, %s460_s21 }
  0x88   : > { %v268_v4 = vmul.f32 %v264_v2, %v260_v0  ;;  %v263_v6 = vld [vmem:[%s223_s25 + $0x18] sm:$0xff]  ;;  %v269_v7 = vmul.f32 %v265_v3, %v261_v1  ;;  %v266_v8 = vld [vmem:[#allocation5 + $0x10] sm:$0xff]  ;;  %v278_v14 = vld [vmem:[#allocation7] sm:$0xff]  ;;  %s337_s13 = sshll.u32 %s259_s23, 4  ;;  %s324_s19 = scalar_lea.sflag [#allocation4], %s974_s14  ;;  %s1004_s13 = int_to_ptr.vmem [resolvable:$true] %s337_s13 }
  0x89   : > { %v267_v9 = vld [vmem:[#allocation5 + $0x18] sm:$0xff]  ;;  %v270_v10 = vmul.f32 %v266_v8, %v262_v5  ;;  %v279_v16 = vld [vmem:[#allocation7 + $0x8] sm:$0xff]  ;;  %v293_v29 = vld [vmem:[#allocation8] sm:$0xff]  ;;  %s666_s30 = scalar_lea.vmem %s1004_s13, 512  ;;  %s750_s5 = smov [#allocation10]  }
  0x8a   : > { %v271_v11 = vmul.f32 %v267_v9, %v263_v6  ;;  %v272_v12 = vadd.f32 %v269_v7, %v268_v4  ;;  %v294_v31 = vld [vmem:[#allocation8 + $0x8] sm:$0xff]  ;;  %p667_p10 = scmp.ne.s32.totalorder %s1004_s13, %s666_s30  ;;  %s670_s29 = sshll.u32 %s750_s5, 4  ;;  %s671_s29 = int_to_ptr.vmem [resolvable:$false] %s670_s29 }
  0x8b   : > { %s672_s6 = scalar_lea.vmem %s671_s29, 1024  ;;  %p673_p12 = scmp.lt.s32.totalorder %s1004_s13, %s671_s29 }
  0x8c   : > { %273 = vadd.xlane.f32.xlu0 %v272_v12  ;;  %v275_v13 = vadd.f32 %v271_v11, %v270_v10  ;;  %p668_p3 = pnand %p667_p10, %p923_p5  ;;  %p674_p1 = scmp.lt.s32.totalorder %s672_s6, %s666_s30 }
  0x8e   : > { %p669_p7 = pneg %p668_p3  ;;  %p675_p2 = por %p674_p1, %p673_p12 }
  0x90   : > { %276 = vadd.xlane.f32.xlu0 %v275_v13  ;;  %p676_p4 = pnand %p675_p2, %p669_p7 }
 0x119   : > { %v274_v15 = vpop.xlane.xlu0 %273 }
 0x11a   : > { %v280_v17 = vmul.f32 %v278_v14, %v274_v15 }
 0x11c   : > { %v283_v20 = vsel %vm282_vm0, %v280_v17, 0.0 }
 0x11d   : > { %v277_v18 = vpop.xlane.xlu0 %276 }
 0x11e   : > { %v281_v19 = vmul.f32 %v279_v16, %v277_v18 }
 0x120   : > { %v284_v21 = vsel %vm282_vm0, %v281_v19, 0.0 }
 0x121   : > { %v285_v22 = vadd.f32 %v284_v21, %v283_v20 }
 0x123   : > { %v286_v23 = vrot.slane %v285_v22, 4 }
 0x125   : > { %v287_v24 = vadd.f32 %v286_v23, %v285_v22 }
 0x127   : > { %v288_v25 = vrot.slane %v287_v24, 2 }
 0x129   : > { %v289_v26 = vadd.f32 %v288_v25, %v287_v24 }
 0x12b   : > { %v290_v27 = vrot.slane %v289_v26, 1 }
 0x12d   : > { %v291_v28 = vadd.f32 %v290_v27, %v289_v26 }
 0x12f   : > { %v292_v30 = vmax.f32 %v291_v28, 0.0 }
 0x131   : > { %v295_v32 = vmul.f32 %v293_v29, %v292_v30  ;;  %v296_v34 = vmul.f32 %v294_v31, %v292_v30 }
 0x133   : > { %v297_v33 = vsel %vm282_vm0, %v295_v32, 0.0  ;;  %v300_v35 = vsel %vm282_vm0, %v296_v34, 0.0 }
 0x134   : > { %298 = vadd.xlane.f32.xlu1 %v297_v33 }
 0x138   : > { %301 = vadd.xlane.f32.xlu1 %v300_v35 }
 0x1c1   : > { %v299_v36 = vpop.xlane.xlu1 %298 }
 0x1c2   : > { %v303_v37 = vsub.f32 0.0, %v299_v36 }
 0x1c4   : > { %v305_v38 = vmul.f32 1.442695, %v303_v37 }
 0x1c5   : > { %v302_v39 = vpop.xlane.xlu1 %301 }
 0x1c6   : > { %544 = vpow2.f32 %v305_v38  ;;  %v304_v40 = vsub.f32 0.0, %v302_v39 }
 0x1c8   : > { %v307_v41 = vmul.f32 1.442695, %v304_v40 }
 0x1ca   : > { %546 = vpow2.f32 %v307_v41 }
 0x1d0   : > { %v545_v42 = vpop.eup %544 }
 0x1d1   : > { %v309_v43 = vadd.f32 1.0, %v545_v42 }
 0x1d3   : > { %548 = vrcp.f32 %v309_v43 }
 0x1d4   : > { %v547_v44 = vpop.eup %546 }
 0x1d5   : > { %v310_v45 = vadd.f32 1.0, %v547_v44 }
 0x1d7   : > { %550 = vrcp.f32 %v310_v45 }
 0x1dd   : > { %v549_v46 = vpop.eup %548 }
 0x1de   : > { %v315_v47 = vmul.f32 %v549_v46, %v260_v0  ;;  %v316_v48 = vmul.f32 %v549_v46, %v261_v1 }
 0x1e0   : > { %319 = vst [vmem:[%s259_s23] sm:$0xff] %v315_v47  ;;  %320 = vst [vmem:[%s259_s23 + $0x8] sm:$0xff] %v316_v48 }
 0x1e1   : > { %v551_v49 = vpop.eup %550 }
 0x1e2   : > { %v317_v50 = vmul.f32 %v551_v49, %v262_v5  ;;  %v318_v51 = vmul.f32 %v551_v49, %v263_v6 }
 0x1e4   : > { %321 = vst [vmem:[%s259_s23 + $0x10] sm:$0xff] %v317_v50  ;;  %322 = vst [vmem:[%s259_s23 + $0x18] sm:$0xff] %v318_v51 }
 0x1e5   : > { %679 = shalt.err (!%p676_p4)
}
 0x1e6   : > { %s680_s7 = scalar_lea.hbm %s1002_s28, 512  ;;  %s684_s8 = scalar_lea.hbm %s1052_s4, 1024 }
 0x1e7   : > { %p681_p9 = scmp.ne.s32.totalorder %s1002_s28, %s680_s7  ;;  %p685_p8 = scmp.lt.u32.totalorder %s1002_s28, %s1052_s4 }
 0x1e8   : > { %p686_p13 = scmp.lt.u32.totalorder %s684_s8, %s680_s7  ;;  %p688_p10 = scmp.lt.u32.totalorder %s680_s7, %s1002_s28 }
 0x1e9   : > { %p682_p0 = pnand %p681_p9, %p923_p5 }
 0x1ea   : > { %p687_p6 = por %p686_p13, %p685_p8 }
 0x1eb   : > { %p683_p11 = pneg %p682_p0 }
 0x1ec   : > { %p689_p3 = por %p688_p10, %p687_p6 }
 0x1ee   : > { %p690_p7 = pnand %p689_p3, %p683_p11 }
 0x1f0   : > { %693 = shalt.err (!%p690_p7)
}
 0x1f1   : > { %s751_s21 = smov 256   ;;  %s752_s23 = smov 16  }
 0x1f2   : > { %475 = dma.vmem_to_hbm [thread:$0]  (%p923_p5), %s1004_s13, 512, %s1002_s28, %s324_s19, %s751_s21, %s751_s21, %s752_s23  }
 0x1f3 PF: > { %s352_s9 = sand.u32 1, %s728_s15   ;;  %p1072_p12 = scmp.ne.s32.totalorder %s1058_s22, 0 }
 0x1f4   : > { %p1073_p1 = scmp.ge.s32.totalorder %s740_s18, 2  ;;  %s353_s24 = scalar_lea.sflag [#allocation4], %s352_s9 }
 0x1f6   : > { %p492_p2 = pnand %p1073_p1, %p1072_p12 }
 0x1f8   : > { %723 = dma.done.wait (!%p492_p2), %s353_s24, 512  }
 0x1f9   : > { %725 = vsyncadd (!%p492_p2), %s353_s24, 4294966784  ;;  %p19_p4 = scmp.ge.s32.totalorder %s891_s27, 4   ;;  %s1074_s15 = smov %s732_s16 }
 0x1fa   : > { %s1075_s16 = smov %s736_s17  ;;  %s1076_s17 = smov %s919_s26 }
 0x1fb   : > { %s1077_s18 = smov %s891_s27  ;;  %21 = sbr.rel (!%p19_p4) target bundleno = 7 (0x7), region = 93 }
 0x202   :  { %358 = vsyncpa [#allocation3], 1 }
 0x203   :  { %360 = vsyncpa [#allocation3 + $0x1], 1 }
 0x204   :  { %361 = vsyncpa [#allocation6], 1 }
 0x205   :  { %362 = vsyncpa [#allocation9], 1 }
 0x206   :  { %363 = vsyncpa [#allocation4], 1 }
 0x207   :  { %365 = vsyncpa [#allocation4 + $0x1], 1 }

</bundles_post_ra>
